<compile_context>
chip_gen: v6e
topology: v6e:2x2x1
jax: 0.10.0
libtpu: 0.0.40
codegen_flags: <defaults>
</compile_context>

<pallas_src>
import jax
import jax.numpy as jnp
from jax.experimental import pallas as pl
from jax.experimental.pallas import tpu as pltpu

LN_EPS = 1e-5   # nn.LayerNorm default eps


def _round_up(x, m):
    return (x + m - 1) // m * m


# ---------------------------------------------------------------- kernel ----

def patch_merging_kernel(x_ref, w_ref, b_ref, o_ref):
    # Feature-major tile: features on sublanes, tokens on the 128-lane axis.
    #   x_ref : (4C, TM)  merged 2x2-patch tokens (one column per token)
    #   w_ref : (2C, 4C)  reduction weight pre-scaled by LayerNorm gamma (input dtype)
    #   b_ref : (2C, 1)   reduction_weight @ beta  (f32)
    #   o_ref : (2C, TM)
    x = x_ref[...].astype(jnp.float32)

    # LayerNorm statistics over the 4C features of every token (biased var, eps=1e-5).
    mean = jnp.mean(x, axis=0, keepdims=True)            # (1, TM)
    xc = x - mean
    var = jnp.mean(xc * xc, axis=0, keepdims=True)       # (1, TM)
    inv = jax.lax.rsqrt(var + LN_EPS)                    # per-token scalar (1, TM)

    # (gamma * W) @ xc on the MXU; per-token 1/std and W@beta folded into the
    # small (2C, TM) output instead of the (4C, TM) input (exact up to reordering).
    acc = jnp.dot(w_ref[...], xc.astype(w_ref.dtype),
                  preferred_element_type=jnp.float32)    # (2C, TM)
    o_ref[...] = (acc * inv + b_ref[...]).astype(o_ref.dtype)


# --------------------------------------------------------------- wrapper ----

def patch_merging(x_nchw, norm_weight, norm_bias, reduction_weight):
    """PatchMerging forward: NCHW in -> NCHW out of shape (B, 2C, H/2, W/2).

    norm_weight / norm_bias : (4C,)    LayerNorm affine parameters
    reduction_weight        : (2C, 4C) nn.Linear weight (out_features, in_features)
    """
    B, C, H, W = x_nchw.shape
    assert H % 2 == 0 and W % 2 == 0, f"x size ({H}*{W}) are not even."
    Ho, Wo = H // 2, W // 2
    C4, C2 = 4 * C, 2 * C
    L = Ho * Wo
    dtype = x_nchw.dtype

    # Fold the LayerNorm affine into the matmul (exact):
    #   W @ ((x - mu)/std * gamma + beta) == ((W*gamma) @ (x - mu)) * (1/std) + W@beta
    w_eff = (reduction_weight.astype(jnp.float32)
             * norm_weight.astype(jnp.float32)[None, :]).astype(dtype)    # (2C, 4C)
    b_eff = (reduction_weight.astype(jnp.float32)
             @ norm_bias.astype(jnp.float32)).reshape(C2, 1)              # (2C, 1) f32

    # Build the (B, 4C, Ho*Wo) token slab directly from NCHW in one XLA transpose.
    # Feature index f = (2*dc + dr)*C + c matches torch.cat([x0, x1, x2, x3], -1).
    # TODO(synk): pull this 2x2 gather into the kernel input path (row-band blocks +
    # in-kernel even/odd de-interleave on the idle XLU) to hit the 1-read/1-write roofline.
    xr = x_nchw.reshape(B, C, Ho, 2, Wo, 2)                   # (b, c, i, dr, j, dc)
    tokens = xr.transpose(0, 5, 3, 1, 2, 4).reshape(B, C4, L)

    # VMEM-aware, lane-dense token tiles (TM multiple of 128). Per-column budget counts
    # double-buffered in/out tiles plus the f32 temporaries the body materializes.
    itm = jnp.dtype(dtype).itemsize
    bytes_per_col = (2 * C4 + 2 * C2) * itm + (3 * C4 + 2 * C2) * 4
    TILE_BUDGET = 8 << 20            # per-grid-step working set; safe on v5e/v6e/v7x
    tm_cap = max(128, (TILE_BUDGET // bytes_per_col) // 128 * 128)
    TM = min(tm_cap, _round_up(L, 128))
    # Guarantee at least 2 grid steps so v7x's two TensorCores both get work.
    if B * pl.cdiv(L, TM) < 2 and TM > 128:
        TM = max(128, _round_up(pl.cdiv(L, 2), 128))
    L_pad = _round_up(L, TM)
    if L_pad != L:
        # Pads at most TM-1 zero columns per image; they never feed a cross-token
        # reduction and are sliced off below.
        tokens = jnp.pad(tokens, ((0, 0), (0, 0), (0, L_pad - L)))

    step_bytes = bytes_per_col * TM + 2 * (C2 * C4 + C2) * 4
    vmem_limit = int(min(48 << 20, max(24 << 20, 2 * step_bytes)))

    grid = (B, L_pad // TM)
    out = pl.pallas_call(
        patch_merging_kernel,
        out_shape=jax.ShapeDtypeStruct((B, C2, L_pad), dtype),
        grid=grid,
        in_specs=[
            pl.BlockSpec((None, C4, TM), lambda b, t: (b, 0, t)),   # token tile
            pl.BlockSpec((C2, C4), lambda b, t: (0, 0)),            # gamma-folded weight
            pl.BlockSpec((C2, 1), lambda b, t: (0, 0)),             # folded bias
        ],
        out_specs=pl.BlockSpec((None, C2, TM), lambda b, t: (b, 0, t)),
        compiler_params=pltpu.CompilerParams(
            dimension_semantics=("parallel", "parallel"),
            vmem_limit_bytes=vmem_limit),
    )(tokens, w_eff, b_eff)

    if L_pad != L:
        out = out[:, :, :L]
    return out.reshape(B, C2, Ho, Wo)       # already NCHW: reshape is free


# ------------------------------------------------------------- reference ----

def patch_merging_ref(x_nchw, norm_weight, norm_bias, reduction_weight):
    # Direct JAX port of the PyTorch forward (for verification only).
    x = jnp.transpose(x_nchw, (0, 2, 3, 1))                   # NHWC
    x0 = x[:, 0::2, 0::2, :]
    x1 = x[:, 1::2, 0::2, :]
    x2 = x[:, 0::2, 1::2, :]
    x3 = x[:, 1::2, 1::2, :]
    m = jnp.concatenate([x0, x1, x2, x3], axis=-1)            # (B, Ho, Wo, 4C)
    mean = m.mean(-1, keepdims=True)
    var = ((m - mean) ** 2).mean(-1, keepdims=True)
    y = (m - mean) * jax.lax.rsqrt(var + LN_EPS)
    y = y * norm_weight + norm_bias
    out = jnp.einsum('bhwk,ok->bhwo', y, reduction_weight)    # Linear, no bias
    return jnp.transpose(out, (0, 3, 1, 2))


# ------------------------------------------------------------------ main ----

if __name__ == "__main__":
    key = jax.random.PRNGKey(0)
    kx, kg, kb, kw = jax.random.split(key, 4)

    B, dim, H, W = 2, 4, 16, 16
    x = jax.random.normal(kx, (B, dim, H, W), jnp.float32)                       # NCHW
    norm_weight = 1.0 + 0.1 * jax.random.normal(kg, (4 * dim,), jnp.float32)
    norm_bias = 0.05 * jax.random.normal(kb, (4 * dim,), jnp.float32)
    reduction_weight = 0.1 * jax.random.normal(kw, (2 * dim, 4 * dim), jnp.float32)

    out = jax.block_until_ready(
        patch_merging(x, norm_weight, norm_bias, reduction_weight))
    ref = jax.block_until_ready(
        patch_merging_ref(x, norm_weight, norm_bias, reduction_weight))

    assert out.shape == (B, 2 * dim, H // 2, W // 2), out.shape
    assert jnp.allclose(out, ref, atol=1e-4, rtol=1e-4), float(jnp.max(jnp.abs(out - ref)))

    print("KERNEL_OK")
</pallas_src>

<mosaic_0001>
module attributes {stable_mosaic.version = 11 : i64} {
  func.func @patch_merging_kernel(%arg0: i32, %arg1: i32, %arg2: memref<1x16x128xf32, #tpu.memory_space<vmem>>, %arg3: memref<8x16xf32, #tpu.memory_space<vmem>>, %arg4: memref<8x1xf32, #tpu.memory_space<vmem>>, %arg5: memref<1x8x128xf32, #tpu.memory_space<vmem>>) attributes {dimension_semantics = [#tpu.dimension_semantics<parallel>, #tpu.dimension_semantics<parallel>], iteration_bounds = array<i64: 2, 1>, scalar_prefetch = 0 : i64, scratch_operands = 0 : i64, tpu.core_type = #tpu.core_type<tc>, window_params = [{transform_indices = @transform_0, window_bounds = array<i64: 1, 16, 128>}, {pipeline_mode = #tpu.pipeline_mode<synchronous>, transform_indices = @transform_1, window_bounds = array<i64: 8, 16>}, {pipeline_mode = #tpu.pipeline_mode<synchronous>, transform_indices = @transform_2, window_bounds = array<i64: 8, 1>}, {transform_indices = @transform_3, window_bounds = array<i64: 1, 8, 128>}]} {
    %c0 = arith.constant 0 : index
    %c0_0 = arith.constant 0 : index
    %c0_1 = arith.constant 0 : index
    %0 = vector.load %arg2[%c0, %c0_0, %c0_1] : memref<1x16x128xf32, #tpu.memory_space<vmem>>, vector<1x16x128xf32>
    %1 = vector.shape_cast %0 : vector<1x16x128xf32> to vector<16x128xf32>
    %cst = arith.constant dense<0.000000e+00> : vector<128xf32>
    %2 = vector.multi_reduction <add>, %1, %cst [0] : vector<16x128xf32> to vector<128xf32>
    %3 = vector.shape_cast %2 : vector<128xf32> to vector<1x128xf32>
    %cst_2 = arith.constant 1.600000e+01 : f32
    %4 = vector.broadcast %cst_2 : f32 to vector<1x128xf32>
    %5 = arith.divf %3, %4 : vector<1x128xf32>
    %6 = vector.broadcast %5 : vector<1x128xf32> to vector<16x128xf32>
    %7 = arith.subf %1, %6 : vector<16x128xf32>
    %8 = arith.mulf %7, %7 : vector<16x128xf32>
    %cst_3 = arith.constant dense<0.000000e+00> : vector<128xf32>
    %9 = vector.multi_reduction <add>, %8, %cst_3 [0] : vector<16x128xf32> to vector<128xf32>
    %10 = vector.shape_cast %9 : vector<128xf32> to vector<1x128xf32>
    %cst_4 = arith.constant 1.600000e+01 : f32
    %11 = vector.broadcast %cst_4 : f32 to vector<1x128xf32>
    %12 = arith.divf %10, %11 : vector<1x128xf32>
    %cst_5 = arith.constant 9.99999974E-6 : f32
    %13 = vector.broadcast %cst_5 : f32 to vector<1x128xf32>
    %14 = arith.addf %12, %13 : vector<1x128xf32>
    %15 = math.rsqrt %14 : vector<1x128xf32>
    %c0_6 = arith.constant 0 : index
    %c0_7 = arith.constant 0 : index
    %16 = vector.load %arg3[%c0_6, %c0_7] : memref<8x16xf32, #tpu.memory_space<vmem>>, vector<8x16xf32>
    %cst_8 = arith.constant dense<0.000000e+00> : vector<8x128xf32>
    %17 = tpu.matmul %16, %7, %cst_8 {dimension_numbers = #tpu.dot_dimension_numbers<[1], [0], [0], [1], [0, 0, 1, 1], [], []>} : vector<8x16xf32>, vector<16x128xf32>, vector<8x128xf32> -> vector<8x128xf32>
    %18 = vector.broadcast %15 : vector<1x128xf32> to vector<8x128xf32>
    %19 = arith.mulf %17, %18 : vector<8x128xf32>
    %c0_9 = arith.constant 0 : index
    %c0_10 = arith.constant 0 : index
    %20 = vector.load %arg4[%c0_9, %c0_10] : memref<8x1xf32, #tpu.memory_space<vmem>>, vector<8x1xf32>
    %21 = vector.broadcast %20 : vector<8x1xf32> to vector<8x128xf32>
    %22 = arith.addf %19, %21 : vector<8x128xf32>
    %c0_11 = arith.constant 0 : index
    %c0_12 = arith.constant 0 : index
    %c0_13 = arith.constant 0 : index
    %23 = vector.load %arg5[%c0_11, %c0_12, %c0_13] : memref<1x8x128xf32, #tpu.memory_space<vmem>>, vector<1x8x128xf32>
    %24 = vector.shape_cast %23 : vector<1x8x128xf32> to vector<8x128xf32>
    %25 = vector.shape_cast %22 : vector<8x128xf32> to vector<1x8x128xf32>
    tpu.vector_store %arg5[%c0_11, %c0_12, %c0_13], %25 {strides = array<i32>} : memref<1x8x128xf32, #tpu.memory_space<vmem>>, vector<1x8x128xf32>,
    return
  }
  func.func @transform_0(%arg0: i32, %arg1: i32) -> (i32, i32, i32) {
    %c0_i32 = arith.constant 0 : i32
    %c0_i32_0 = arith.constant 0 : i32
    return %arg0, %c0_i32, %arg1 : i32, i32, i32
  }
  func.func @transform_1(%arg0: i32, %arg1: i32) -> (i32, i32) {
    %c0_i32 = arith.constant 0 : i32
    %c0_i32_0 = arith.constant 0 : i32
    %c0_i32_1 = arith.constant 0 : i32
    return %c0_i32, %c0_i32_0 : i32, i32
  }
  func.func @transform_2(%arg0: i32, %arg1: i32) -> (i32, i32) {
    %c0_i32 = arith.constant 0 : i32
    %c0_i32_0 = arith.constant 0 : i32
    %c0_i32_1 = arith.constant 0 : i32
    return %c0_i32, %c0_i32_0 : i32, i32
  }
  func.func @transform_3(%arg0: i32, %arg1: i32) -> (i32, i32, i32) {
    %c0_i32 = arith.constant 0 : i32
    %c0_i32_0 = arith.constant 0 : i32
    return %arg0, %c0_i32, %arg1 : i32, i32, i32
  }
}

</mosaic_0001>

<bundles_post_ra>
// kernel: tpu_custom_call.1
= control target key start
LH: loop header
LB: loop body
LE: loop exit
PB: predicated region body
PF: predicated region fallthrough
CT: control target
= control target key end

     0   :  { %8 = vsyncpa [#allocation3], 0  ;;  %s783_s0 = inlined_call_operand.hbm [shape: f32[2,16,128], index: 0, kind: input, shape index: {}]   ;;  %s784_s1 = inlined_call_operand.vmem [shape: f32[8,16], index: 1, kind: input, shape index: {}]   ;;  %s785_s2 = inlined_call_operand.vmem [shape: f32[8,1], index: 2, kind: input, shape index: {}]   ;;  %s786_s3 = inlined_call_operand.hbm [shape: f32[2,8,128], index: 3, kind: output, shape index: {}]  }
   0x1   :  { %10 = vsyncpa [#allocation3 + $0x1], 0 }
   0x2   :  { %11 = vsyncpa [#allocation4], 0 }
   0x3   :  { %13 = vsyncpa [#allocation4 + $0x1], 0  ;;  %s644_s12 = smov 0   ;;  %s646_s13 = smov 0  }
   0x4   :  { %s648_s14 = smov 0   ;;  %s650_s15 = smov 0  }
   0x5   :  { %s652_s16 = smov 0   ;;  %s654_s17 = smov 0  }
   0x6 LB: > { %s411_s18 = sadd.s32 4294967295, %s615_s17   ;;  %s412_s19 = sadd.s32 4294967294, %s615_s17   ;;  %s615_s17 = sphi %s654_s17, %s19_s17   ;;  %s611_s16 = sphi %s652_s16, %s797_s16   ;;  %s607_s15 = sphi %s650_s15, %s796_s15   ;;  %s603_s14 = sphi %s648_s14, %s795_s14   ;;  %s599_s13 = sphi %s646_s13, %s794_s13   ;;  %s595_s12 = sphi %s644_s12, %s793_s12  }
   0x7   : > { %s31_s20 = sadd.s32 1, %s611_s16  ;;  %s40_s21 = sadd.s32 1, %s603_s14 }
   0x8   : > { %p33_p0 = scmp.ge.s32.totalorder %s31_s20, 2  ;;  %p47_p1 = scmp.ne.s32.totalorder %s603_s14, %s599_s13 }
   0x9   : > { %p48_p2 = scmp.eq.s32.totalorder %s615_s17, 0  ;;  %p53_p3 = scmp.ne.s32.totalorder %s599_s13, %s595_s12 }
   0xa   : > { %s799_s20 = smov (%p33_p0, %s31_s20), 0  ;;  %p54_p5 = scmp.eq.s32.totalorder %s411_s18, 0 }
   0xb   : > { %p685_p4 = por %p48_p2, %p47_p1  ;;  %s35_s23 = ssub.s32 %s611_s16, %s799_s20 }
   0xc   : > { %p121_p6 = scmp.eq.s32.totalorder %s411_s18, 1  ;;  %p38_p7 = scmp.eq.s32.totalorder %s35_s23, 0 }
   0xd   : > { %p691_p8 = por %p54_p5, %p53_p3  ;;  %p127_p10 = scmp.eq.s32.totalorder %s412_s19, 1 }
   0xe   : > { %p695_p9 = por %p121_p6, %p47_p1  ;;  %p449_p13 = scmp.lt.s32.totalorder %s615_s17, 2 }
   0xf   : > { %s700_s26 = scalar_select %p38_p7, %s603_s14, %s40_s21  }
  0x10   : > { %p702_p11 = por %p127_p10, %p53_p3  ;;  %s153_s28 = sand.u32 1, %s603_s14  }
  0x11   : > { %s415_s29 = sshll.u32 %s153_s28, 4  ;;  %s426_s30 = sshll.u32 %s611_s16, 8 }
  0x12   : > { %s164_s6 = scalar_lea.hbm %s783_s0, %s426_s30  ;;  %s157_s7 = scalar_lea.vmem [#allocation2], %s415_s29 }
  0x13   : > { %s165_s8 = sshll.u32 %s157_s7, 4  ;;  %p715_p0 = pnand %p449_p13, %p685_p4  ;;  %s166_s8 = int_to_ptr.vmem [resolvable:$true] %s165_s8 }
  0x14   : > { %p418_p1 = scmp.ge.s32.totalorder %s615_s17, 1  ;;  %s154_s10 = scalar_lea.sflag [#allocation3], %s153_s28 }
  0x15   : > { %p509_p2 = pneg %p715_p0  ;;  %s520_s11 = scalar_lea.vmem %s166_s8, 256 }
  0x16   : > { %p521_p3 = scmp.ne.s32.totalorder %s166_s8, %s520_s11  ;;  %s617_s18 = smov [#allocation2]  }
  0x17   : > { %s525_s19 = sshll.u32 %s617_s18, 4  ;;  %s526_s19 = int_to_ptr.vmem [resolvable:$false] %s525_s19 }
  0x18   : > { %p523_p5 = pnand %p521_p3, %p509_p2  ;;  %s527_s21 = scalar_lea.vmem %s526_s19, 512 }
  0x19   : > { %p528_p7 = scmp.lt.s32.totalorder %s166_s8, %s526_s19  ;;  %p529_p10 = scmp.lt.s32.totalorder %s527_s21, %s520_s11 }
  0x1a   : > { %p524_p6 = pneg %p523_p5 }
  0x1b   : > { %p530_p12 = por %p529_p10, %p528_p7 }
  0x1d   : > { %p531_p4 = pnand %p530_p12, %p524_p6 }
  0x1f   : > { %534 = shalt.err (!%p531_p4)
}
  0x20   : > { %s618_s22 = smov 128   ;;  %s619_s23 = smov 8  }
  0x21   : > { %444 = dma.hbm_to_vmem [thread:$0]  (!%p715_p0), %s164_s6, 256, %s166_s8, %s154_s10, %s618_s22, %s618_s22, %s619_s23  }
  0x22   : > { %p173_p13 = scmp.lt.s32.totalorder %s615_s17, 3 }
  0x24   : > { %p174_p2 = pnand %p418_p1, %p173_p13 }
  0x25   : > { %s728_s28 = sand.u32 (!%p174_p2), 1, %s599_s13  }
  0x26   : > { %177 = sbr.rel (%p174_p2) target bundleno = 276 (0x114), region = 32  ;;  %s419_s29 = sshll.u32 (!%p174_p2), %s728_s28, 4 }
  0x27   : > { %s180_s30 = scalar_lea.sflag (!%p174_p2), [#allocation3], %s728_s28  ;;  %s183_s4 = scalar_lea.vmem (!%p174_p2), [#allocation2], %s419_s29 }
  0x2b   : > { %586 = dma.done.wait (%p691_p8), %s180_s30, 256  }
  0x2c   : > { %588 = vsyncadd (%p691_p8), %s180_s30, 4294967040  ;;  %v620_v0 = vmov 0.0   ;;  %vm621_vm0 = vmmov 0   ;;  %v622_v1 = vmov 0   ;;  %v206_v2 = vld [vmem:[%s183_s4] sm:$0xff]  ;;  %v207_v3 = vld [vmem:[%s183_s4 + $0x8] sm:$0xff] }
  0x2d   : > { %430 = vmatprep.subr.mxu0 %v620_v0  ;;  %434 = vmatprep.mubr.msk.f32.mxu0 %vm621_vm0, %v620_v0  ;;  %v208_v4 = vadd.f32 %v207_v3, %v206_v2  ;;  %v307_v5 = vld [vmem:[%s785_s2] sm:$0xff]  ;;  %vm232_vm1 = vcmask 130048   ;;  %s420_s8 = sshll.u32 %s728_s28, 3  ;;  %s423_s9 = sshll.u32 %s607_s15, 7 }
  0x2e   : > { %504 = vset.pattern.permute.xlu0 %v622_v1  ;;  %v231_v17 = vld [vmem:[%s784_s1] sm:$0xff]  ;;  %s205_s10 = scalar_lea.vmem [#allocation5], %s420_s8  ;;  %s328_s21 = scalar_lea.hbm %s786_s3, %s423_s9 }
  0x2f   : > { %310 = vperm.xlu0 %504, %v307_v5   ;;  %v209_v6 = vrot.slane %v208_v4, 4  ;;  %s330_s11 = sshll.u32 %s205_s10, 4  ;;  %s316_s22 = scalar_lea.sflag [#allocation4], %s728_s28  ;;  %s331_s11 = int_to_ptr.vmem [resolvable:$true] %s330_s11 }
  0x30   : > { %s535_s23 = scalar_lea.vmem %s331_s11, 128  ;;  %s623_s29 = smov [#allocation5]  }
  0x31   : > { %v210_v7 = vadd.f32 %v209_v6, %v208_v4  ;;  %p536_p8 = scmp.ne.s32.totalorder %s331_s11, %s535_s23  ;;  %s539_s30 = sshll.u32 %s623_s29, 4  ;;  %s540_s30 = int_to_ptr.vmem [resolvable:$false] %s539_s30 }
  0x32   : > { %s541_s15 = scalar_lea.vmem %s540_s30, 256  ;;  %p542_p1 = scmp.lt.s32.totalorder %s331_s11, %s540_s30 }
  0x33   : > { %v211_v8 = vrot.slane %v210_v7, 2  ;;  %p537_p12 = pnand %p536_p8, %p695_p9  ;;  %p543_p3 = scmp.lt.s32.totalorder %s541_s15, %s535_s23 }
  0x35   : > { %v212_v9 = vadd.f32 %v211_v8, %v210_v7  ;;  %p538_p0 = pneg %p537_p12  ;;  %p544_p5 = por %p543_p3, %p542_p1 }
  0x37   : > { %v213_v10 = vrot.slane %v212_v9, 1  ;;  %p545_p6 = pnand %p544_p5, %p538_p0 }
  0x39   : > { %v214_v11 = vadd.f32 %v213_v10, %v212_v9 }
  0x3b   : > { %v216_v12 = vmul.f32 0.0625, %v214_v11 }
  0x3d   : > { %v218_v13 = vsub.f32 %v207_v3, %v216_v12  ;;  %v217_v14 = vsub.f32 %v206_v2, %v216_v12 }
  0x3f   : > { %v220_v15 = vmul.f32 %v218_v13, %v218_v13  ;;  %431 = vmatpush3.msra.mxu0 %v218_v13  ;;  %v219_v16 = vmul.f32 %v217_v14, %v217_v14 }
  0x40   : > { %432 = vmatprep.subr.mxu0 %v620_v0 }
  0x41   : > { %v221_v18 = vadd.f32 %v220_v15, %v219_v16  ;;  %433 = vmatpush3.msra.mxu0 %v217_v14 }
  0x42   : > { %435 = vmatmul.mubr.msk.f32.vlgmr.msra.gmra.mxu0 %vm232_vm1, %v231_v17 }
  0x43   : > { %v222_v19 = vrot.slane %v221_v18, 4 }
  0x45   : > { %v223_v20 = vadd.f32 %v222_v19, %v221_v18 }
  0x47   : > { %v224_v21 = vrot.slane %v223_v20, 2 }
  0x49   : > { %v225_v22 = vadd.f32 %v224_v21, %v223_v20 }
  0x4b   : > { %v226_v23 = vrot.slane %v225_v22, 1 }
  0x4d   : > { %v227_v24 = vadd.f32 %v226_v23, %v225_v22 }
  0x4f   : > { %v228_v25 = vmul.f32 0.0625, %v227_v24 }
  0x51   : > { %v229_v26 = vadd.f32 1e-05, %v228_v25 }
  0x53   : > { %505 = vrsqrt.f32 %v229_v26 }
  0x60   : > { %v506_v27 = vpop.eup %505 }
  0xaa   : > { %v311_v29 = vpop.permute.xlu0 %310 }
 0x102   : > { %v302_v28 = vpop.f32.mrf.mxu0 }
 0x103   : > { %v306_v30 = vmul.f32 %v506_v27, %v302_v28 }
 0x104   : > { %v436_v31 = vpop.f32.mrf.mxu0 }
 0x105   : > { %v313_v32 = vadd.f32 %v311_v29, %v306_v30 }
 0x107   : > { %314 = vst [vmem:[%s205_s10] sm:$0xff] %v313_v32 }
 0x108   : > { %548 = shalt.err (!%p545_p6)
}
 0x109   : > { %s549_s4 = scalar_lea.hbm %s328_s21, 128  ;;  %s553_s6 = scalar_lea.hbm %s786_s3, 256 }
 0x10a   : > { %p550_p7 = scmp.ne.s32.totalorder %s328_s21, %s549_s4  ;;  %p554_p13 = scmp.lt.s32.totalorder %s328_s21, %s786_s3 }
 0x10b   : > { %p555_p2 = scmp.lt.s32.totalorder %s553_s6, %s549_s4 }
 0x10c   : > { %p551_p10 = pnand %p550_p7, %p695_p9 }
 0x10d   : > { %p556_p8 = por %p555_p2, %p554_p13 }
 0x10e   : > { %p552_p4 = pneg %p551_p10 }
 0x110   : > { %p557_p12 = pnand %p556_p8, %p552_p4 }
 0x112   : > { %560 = shalt.err (!%p557_p12)
}
 0x113   : > { %439 = dma.vmem_to_hbm [thread:$0]  (%p695_p9), %s331_s11, 128, %s328_s21, %s316_s22  }
 0x114 PF: > { %s342_s8 = sand.u32 1, %s595_s12   ;;  %p792_p0 = scmp.ge.s32.totalorder %s615_s17, 2 }
 0x115   : > { %s343_s9 = scalar_lea.sflag [#allocation4], %s342_s8 }
 0x116   : > { %p446_p1 = pnand %p792_p0, %p702_p11 }
 0x118   : > { %p447_p3 = pneg %p446_p1 }
 0x11a   : > { %590 = dma.done.wait (%p447_p3), %s343_s9, 128  }
 0x11b   : > { %592 = vsyncadd (%p447_p3), %s343_s9, 4294967168  ;;  %s19_s17 = sadd.s32 1, %s615_s17   ;;  %s793_s12 = smov %s599_s13 }
 0x11c   : > { %p16_p5 = scmp.ge.s32.totalorder %s19_s17, 4   ;;  %s794_s13 = smov %s603_s14 }
 0x11d   : > { %s795_s14 = smov %s700_s26  ;;  %s796_s15 = smov %s611_s16 }
 0x11e   : > { %s797_s16 = smov %s799_s20  ;;  %18 = sbr.rel (!%p16_p5) target bundleno = 6 (0x6), region = 77 }
 0x123   :  { %348 = vsyncpa [#allocation3], 1 }
 0x124   :  { %350 = vsyncpa [#allocation3 + $0x1], 1 }
 0x125   :  { %351 = vsyncpa [#allocation4], 1 }
 0x126   :  { %353 = vsyncpa [#allocation4 + $0x1], 1 }

</bundles_post_ra>
